<compile_context>
chip_gen: v6e
topology: v6e:2x2x1
jax: 0.10.0
libtpu: 0.0.40
codegen_flags: <defaults>
</compile_context>

<pallas_src>
import functools

import jax
import jax.numpy as jnp
from jax.experimental import pallas as pl
from jax.experimental.pallas import tpu as pltpu


def _round_up(x, m):
    return ((x + m - 1) // m) * m


def _fused_gcn_kernel(a_ref, x_ref, w_ref, b_ref, out_ref, *, num_layers):
    """All GCN layers for one graph; adjacency loaded once, h stays on-chip."""
    a = a_ref[0]                       # [N_pad, N_pad] bf16, loaded once per graph
    h = x_ref[0]                       # [N_pad, F_PAD] bf16 current activation
    for li in range(num_layers):       # static unroll (small, fixed layer count)
        # (A @ h) @ W, both matmuls with native bf16 operands + f32 accumulation.
        agg = jnp.dot(a, h, preferred_element_type=jnp.float32)          # [N_pad, F_PAD] f32
        h32 = jnp.dot(agg.astype(jnp.bfloat16), w_ref[li],
                      preferred_element_type=jnp.float32) + b_ref[li]    # + f32 bias (VPU)
        if li < num_layers - 1:
            h = jnp.maximum(h32, 0.0).astype(jnp.bfloat16)               # ReLU, back to bf16
        else:
            h = h32                                                      # final layer stays f32
    out_ref[0] = h.astype(out_ref.dtype)   # lane-dense store (F_PAD % 128 == 0)


def _gcn_forward_impl(g, nodes, w_stack, b_stack, *, input_dim, num_labels,
                      num_layers):
    """Batched padded forward. g: [B,N,N], nodes: [B,N,input_dim]."""
    batch, n, _ = g.shape
    f_pad = w_stack.shape[-1]
    n_pad = _round_up(n, 128)          # lane-dense adjacency, MXU-deep contraction

    # Zero padding is an exact no-op for the true output rows/cols: padded A
    # rows/cols are zero, padded W rows/cols and bias lanes are zero.
    g_pad = jnp.pad(g.astype(jnp.bfloat16),
                    ((0, 0), (0, n_pad - n), (0, n_pad - n)))
    x_pad = jnp.pad(nodes.astype(jnp.bfloat16),
                    ((0, 0), (0, n_pad - n), (0, f_pad - input_dim)))

    kernel = functools.partial(_fused_gcn_kernel, num_layers=num_layers)

    out_pad = pl.pallas_call(
        kernel,
        out_shape=jax.ShapeDtypeStruct((batch, n_pad, f_pad), jnp.float32),
        grid=(batch,),
        in_specs=[
            pl.BlockSpec((1, n_pad, n_pad), lambda b: (b, 0, 0)),
            pl.BlockSpec((1, n_pad, f_pad), lambda b: (b, 0, 0)),
            # Constant block index across the grid -> weights DMA'd once.
            pl.BlockSpec((num_layers, f_pad, f_pad), lambda b: (0, 0, 0)),
            pl.BlockSpec((num_layers, 1, f_pad), lambda b: (0, 0, 0)),
        ],
        out_specs=pl.BlockSpec((1, n_pad, f_pad), lambda b: (b, 0, 0)),
        compiler_params=pltpu.CompilerParams(
            dimension_semantics=("parallel",)),   # batch axis -> megacore on v7x
    )(g_pad, x_pad, w_stack, b_stack)

    return out_pad[:, :n, :num_labels]


class GNNClassifier:
    """JAX/Pallas port of the abstract PyTorch GNNClassifier (GCN layers)."""

    def __init__(self, input_dim, hidden_dim, num_labels, num_layers, key):
        self.input_dim = input_dim
        self.hidden_dim = hidden_dim
        self.num_labels = num_labels
        self.num_layers = num_layers
        self.params = self._build_layers(key)    # f32 reference params

        # Pad + stack parameters once at init (not per forward call).
        self.f_pad = _round_up(max(input_dim, hidden_dim, num_labels), 128)
        w_stack = jnp.zeros((num_layers, self.f_pad, self.f_pad), jnp.float32)
        b_stack = jnp.zeros((num_layers, 1, self.f_pad), jnp.float32)
        for li, (w, b) in enumerate(self.params):
            fin, fout = w.shape
            w_stack = w_stack.at[li, :fin, :fout].set(w)
            b_stack = b_stack.at[li, 0, :fout].set(b)
        self.w_stack = w_stack.astype(jnp.bfloat16)   # bf16 MXU operands
        self.b_stack = b_stack                        # f32 bias (added post-acc)

        # jit fuses pad + pallas_call + slice and removes dispatch overhead.
        self._forward_jit = jax.jit(functools.partial(
            _gcn_forward_impl,
            input_dim=input_dim, num_labels=num_labels, num_layers=num_layers))

    def _build_layers(self, key):
        dims = (
            [self.input_dim]
            + [self.hidden_dim] * (self.num_layers - 1)
            + [self.num_labels]
        )
        params = []
        for i in range(self.num_layers):
            key, wk, bk = jax.random.split(key, 3)
            fan_in, fan_out = dims[i], dims[i + 1]
            scale = 1.0 / jnp.sqrt(jnp.float32(fan_in))
            w = jax.random.uniform(
                wk, (fan_in, fan_out), jnp.float32, minval=-scale, maxval=scale)
            b = jax.random.uniform(
                bk, (fan_out,), jnp.float32, minval=-scale, maxval=scale)
            params.append((w, b))
        return params

    def forward(self, g, nodes):
        """Accepts a single graph ([N,N],[N,F]) or a batch ([B,N,N],[B,N,F])."""
        single = g.ndim == 2
        if single:
            g, nodes = g[None], nodes[None]
        out = self._forward_jit(g, nodes, self.w_stack, self.b_stack)
        return out[0] if single else out

    # pure-f32 JAX reference for a sanity check
    def forward_ref(self, g, nodes):
        x = nodes
        for li, (w, b) in enumerate(self.params):
            x = g @ x @ w + b[None, :]
            if li < self.num_layers - 1:
                x = jnp.maximum(x, 0.0)
        return x


def make_normalized_adjacency(key, n, edge_prob=0.3):
    """Dense symmetric normalized adjacency with self-loops: D^-1/2 (A+I) D^-1/2."""
    a = (jax.random.uniform(key, (n, n)) < edge_prob).astype(jnp.float32)
    a = jnp.maximum(a, a.T)                      # symmetric
    a = a + jnp.eye(n, dtype=jnp.float32)        # self-loops
    a = jnp.minimum(a, 1.0)
    deg = jnp.sum(a, axis=1)
    d_inv_sqrt = 1.0 / jnp.sqrt(deg)
    return a * d_inv_sqrt[:, None] * d_inv_sqrt[None, :]


if __name__ == "__main__":
    key = jax.random.PRNGKey(0)
    k_adj, k_feat, k_params = jax.random.split(key, 3)

    num_nodes = 16
    input_dim = 8
    hidden_dim = 32
    num_labels = 4
    num_layers = 3
    batch = 4          # batch of graphs per pallas_call (amortizes fixed overhead)

    adj_keys = jax.random.split(k_adj, batch)
    feat_keys = jax.random.split(k_feat, batch)
    g = jnp.stack([make_normalized_adjacency(k, num_nodes) for k in adj_keys])
    nodes = jnp.stack(
        [jax.random.normal(k, (num_nodes, input_dim), jnp.float32)
         for k in feat_keys])

    model = GNNClassifier(input_dim, hidden_dim, num_labels, num_layers, k_params)

    # Batched path (one pallas_call for all graphs).
    out = jax.block_until_ready(model.forward(g, nodes))
    assert out.shape == (batch, num_nodes, num_labels), out.shape

    ref = jnp.stack([model.forward_ref(g[i], nodes[i]) for i in range(batch)])
    # bf16 MXU operands vs f32 reference -> loosened tolerance.
    assert jnp.allclose(out, ref, atol=5e-2, rtol=5e-2), (
        "mismatch vs JAX reference (max abs diff "
        f"{float(jnp.max(jnp.abs(out - ref)))})")

    # Single-graph path reuses the same kernel via a size-1 batch.
    out1 = jax.block_until_ready(model.forward(g[0], nodes[0]))
    assert out1.shape == (num_nodes, num_labels), out1.shape
    assert jnp.allclose(out1, ref[0], atol=5e-2, rtol=5e-2)

    print("KERNEL_OK")
</pallas_src>

<mosaic_0001>
module attributes {stable_mosaic.version = 11 : i64} {
  func.func @_fused_gcn_kernel(%arg0: i32, %arg1: memref<1x128x128xbf16, #tpu.memory_space<vmem>>, %arg2: memref<1x128x128xbf16, #tpu.memory_space<vmem>>, %arg3: memref<3x128x128xbf16, #tpu.memory_space<vmem>>, %arg4: memref<3x1x128xf32, #tpu.memory_space<vmem>>, %arg5: memref<1x128x128xf32, #tpu.memory_space<vmem>>) attributes {dimension_semantics = [#tpu.dimension_semantics<parallel>], iteration_bounds = array<i64: 4>, scalar_prefetch = 0 : i64, scratch_operands = 0 : i64, tpu.core_type = #tpu.core_type<tc>, window_params = [{transform_indices = @transform_0, window_bounds = array<i64: 1, 128, 128>}, {transform_indices = @transform_1, window_bounds = array<i64: 1, 128, 128>}, {pipeline_mode = #tpu.pipeline_mode<synchronous>, transform_indices = @transform_2, window_bounds = array<i64: 3, 128, 128>}, {pipeline_mode = #tpu.pipeline_mode<synchronous>, transform_indices = @transform_3, window_bounds = array<i64: 3, 1, 128>}, {transform_indices = @transform_4, window_bounds = array<i64: 1, 128, 128>}]} {
    %c0 = arith.constant 0 : index
    %c0_0 = arith.constant 0 : index
    %c0_1 = arith.constant 0 : index
    %0 = vector.load %arg1[%c0, %c0_0, %c0_1] : memref<1x128x128xbf16, #tpu.memory_space<vmem>>, vector<1x128x128xbf16>
    %1 = vector.shape_cast %0 : vector<1x128x128xbf16> to vector<128x128xbf16>
    %c0_2 = arith.constant 0 : index
    %c0_3 = arith.constant 0 : index
    %c0_4 = arith.constant 0 : index
    %2 = vector.load %arg2[%c0_2, %c0_3, %c0_4] : memref<1x128x128xbf16, #tpu.memory_space<vmem>>, vector<1x128x128xbf16>
    %3 = vector.shape_cast %2 : vector<1x128x128xbf16> to vector<128x128xbf16>
    %cst = arith.constant dense<0.000000e+00> : vector<128x128xf32>
    %4 = tpu.matmul %1, %3, %cst {dimension_numbers = #tpu.dot_dimension_numbers<[1], [0], [0], [1], [0, 0, 1, 1], [], []>} : vector<128x128xbf16>, vector<128x128xbf16>, vector<128x128xf32> -> vector<128x128xf32>
    %5 = arith.truncf %4 : vector<128x128xf32> to vector<128x128xbf16>
    %c0_5 = arith.constant 0 : index
    %c0_6 = arith.constant 0 : index
    %c0_7 = arith.constant 0 : index
    %6 = vector.load %arg3[%c0_5, %c0_6, %c0_7] : memref<3x128x128xbf16, #tpu.memory_space<vmem>>, vector<1x128x128xbf16>
    %7 = vector.shape_cast %6 : vector<1x128x128xbf16> to vector<128x128xbf16>
    %cst_8 = arith.constant dense<0.000000e+00> : vector<128x128xf32>
    %8 = tpu.matmul %5, %7, %cst_8 {dimension_numbers = #tpu.dot_dimension_numbers<[1], [0], [0], [1], [0, 0, 1, 1], [], []>} : vector<128x128xbf16>, vector<128x128xbf16>, vector<128x128xf32> -> vector<128x128xf32>
    %c0_9 = arith.constant 0 : index
    %c0_10 = arith.constant 0 : index
    %c0_11 = arith.constant 0 : index
    %9 = vector.load %arg4[%c0_9, %c0_10, %c0_11] : memref<3x1x128xf32, #tpu.memory_space<vmem>>, vector<1x1x128xf32>
    %10 = vector.shape_cast %9 : vector<1x1x128xf32> to vector<1x128xf32>
    %11 = vector.broadcast %10 : vector<1x128xf32> to vector<128x128xf32>
    %12 = arith.addf %8, %11 : vector<128x128xf32>
    %cst_12 = arith.constant 0.000000e+00 : f32
    %13 = vector.broadcast %cst_12 : f32 to vector<128x128xf32>
    %14 = arith.maximumf %12, %13 : vector<128x128xf32>
    %15 = arith.truncf %14 : vector<128x128xf32> to vector<128x128xbf16>
    %cst_13 = arith.constant dense<0.000000e+00> : vector<128x128xf32>
    %16 = tpu.matmul %1, %15, %cst_13 {dimension_numbers = #tpu.dot_dimension_numbers<[1], [0], [0], [1], [0, 0, 1, 1], [], []>} : vector<128x128xbf16>, vector<128x128xbf16>, vector<128x128xf32> -> vector<128x128xf32>
    %17 = arith.truncf %16 : vector<128x128xf32> to vector<128x128xbf16>
    %c1 = arith.constant 1 : index
    %c0_14 = arith.constant 0 : index
    %c0_15 = arith.constant 0 : index
    %18 = vector.load %arg3[%c1, %c0_14, %c0_15] : memref<3x128x128xbf16, #tpu.memory_space<vmem>>, vector<1x128x128xbf16>
    %19 = vector.shape_cast %18 : vector<1x128x128xbf16> to vector<128x128xbf16>
    %cst_16 = arith.constant dense<0.000000e+00> : vector<128x128xf32>
    %20 = tpu.matmul %17, %19, %cst_16 {dimension_numbers = #tpu.dot_dimension_numbers<[1], [0], [0], [1], [0, 0, 1, 1], [], []>} : vector<128x128xbf16>, vector<128x128xbf16>, vector<128x128xf32> -> vector<128x128xf32>
    %c1_17 = arith.constant 1 : index
    %c0_18 = arith.constant 0 : index
    %c0_19 = arith.constant 0 : index
    %21 = vector.load %arg4[%c1_17, %c0_18, %c0_19] : memref<3x1x128xf32, #tpu.memory_space<vmem>>, vector<1x1x128xf32>
    %22 = vector.shape_cast %21 : vector<1x1x128xf32> to vector<1x128xf32>
    %23 = vector.broadcast %22 : vector<1x128xf32> to vector<128x128xf32>
    %24 = arith.addf %20, %23 : vector<128x128xf32>
    %cst_20 = arith.constant 0.000000e+00 : f32
    %25 = vector.broadcast %cst_20 : f32 to vector<128x128xf32>
    %26 = arith.maximumf %24, %25 : vector<128x128xf32>
    %27 = arith.truncf %26 : vector<128x128xf32> to vector<128x128xbf16>
    %cst_21 = arith.constant dense<0.000000e+00> : vector<128x128xf32>
    %28 = tpu.matmul %1, %27, %cst_21 {dimension_numbers = #tpu.dot_dimension_numbers<[1], [0], [0], [1], [0, 0, 1, 1], [], []>} : vector<128x128xbf16>, vector<128x128xbf16>, vector<128x128xf32> -> vector<128x128xf32>
    %29 = arith.truncf %28 : vector<128x128xf32> to vector<128x128xbf16>
    %c2 = arith.constant 2 : index
    %c0_22 = arith.constant 0 : index
    %c0_23 = arith.constant 0 : index
    %30 = vector.load %arg3[%c2, %c0_22, %c0_23] : memref<3x128x128xbf16, #tpu.memory_space<vmem>>, vector<1x128x128xbf16>
    %31 = vector.shape_cast %30 : vector<1x128x128xbf16> to vector<128x128xbf16>
    %cst_24 = arith.constant dense<0.000000e+00> : vector<128x128xf32>
    %32 = tpu.matmul %29, %31, %cst_24 {dimension_numbers = #tpu.dot_dimension_numbers<[1], [0], [0], [1], [0, 0, 1, 1], [], []>} : vector<128x128xbf16>, vector<128x128xbf16>, vector<128x128xf32> -> vector<128x128xf32>
    %c2_25 = arith.constant 2 : index
    %c0_26 = arith.constant 0 : index
    %c0_27 = arith.constant 0 : index
    %33 = vector.load %arg4[%c2_25, %c0_26, %c0_27] : memref<3x1x128xf32, #tpu.memory_space<vmem>>, vector<1x1x128xf32>
    %34 = vector.shape_cast %33 : vector<1x1x128xf32> to vector<1x128xf32>
    %35 = vector.broadcast %34 : vector<1x128xf32> to vector<128x128xf32>
    %36 = arith.addf %32, %35 : vector<128x128xf32>
    %c0_28 = arith.constant 0 : index
    %c0_29 = arith.constant 0 : index
    %c0_30 = arith.constant 0 : index
    %37 = vector.load %arg5[%c0_28, %c0_29, %c0_30] : memref<1x128x128xf32, #tpu.memory_space<vmem>>, vector<1x128x128xf32>
    %38 = vector.shape_cast %37 : vector<1x128x128xf32> to vector<128x128xf32>
    %39 = vector.shape_cast %36 : vector<128x128xf32> to vector<1x128x128xf32>
    tpu.vector_store %arg5[%c0_28, %c0_29, %c0_30], %39 {strides = array<i32>} : memref<1x128x128xf32, #tpu.memory_space<vmem>>, vector<1x128x128xf32>,
    return
  }
  func.func @transform_0(%arg0: i32) -> (i32, i32, i32) {
    %c0_i32 = arith.constant 0 : i32
    %c0_i32_0 = arith.constant 0 : i32
    %c0_i32_1 = arith.constant 0 : i32
    return %arg0, %c0_i32, %c0_i32_0 : i32, i32, i32
  }
  func.func @transform_1(%arg0: i32) -> (i32, i32, i32) {
    %c0_i32 = arith.constant 0 : i32
    %c0_i32_0 = arith.constant 0 : i32
    %c0_i32_1 = arith.constant 0 : i32
    return %arg0, %c0_i32, %c0_i32_0 : i32, i32, i32
  }
  func.func @transform_2(%arg0: i32) -> (i32, i32, i32) {
    %c0_i32 = arith.constant 0 : i32
    %c0_i32_0 = arith.constant 0 : i32
    %c0_i32_1 = arith.constant 0 : i32
    %c0_i32_2 = arith.constant 0 : i32
    return %c0_i32, %c0_i32_0, %c0_i32_1 : i32, i32, i32
  }
  func.func @transform_3(%arg0: i32) -> (i32, i32, i32) {
    %c0_i32 = arith.constant 0 : i32
    %c0_i32_0 = arith.constant 0 : i32
    %c0_i32_1 = arith.constant 0 : i32
    %c0_i32_2 = arith.constant 0 : i32
    return %c0_i32, %c0_i32_0, %c0_i32_1 : i32, i32, i32
  }
  func.func @transform_4(%arg0: i32) -> (i32, i32, i32) {
    %c0_i32 = arith.constant 0 : i32
    %c0_i32_0 = arith.constant 0 : i32
    %c0_i32_1 = arith.constant 0 : i32
    return %arg0, %c0_i32, %c0_i32_0 : i32, i32, i32
  }
}

</mosaic_0001>

<bundles_post_ra>
// kernel: _gcn_forward_impl.1
= control target key start
LH: loop header
LB: loop body
LE: loop exit
PB: predicated region body
PF: predicated region fallthrough
CT: control target
= control target key end

     0   :  { %s1763_s15 = smov 0   ;;  %s1946_s0 = inlined_call_operand.vmem [shape: bf16[4,128,128], index: 0, kind: input, shape index: {}]   ;;  %s1947_s1 = inlined_call_operand.vmem [shape: bf16[4,128,128], index: 1, kind: input, shape index: {}]   ;;  %s1948_s2 = inlined_call_operand.vmem [shape: bf16[3,128,128], index: 2, kind: input, shape index: {}]   ;;  %s1949_s3 = inlined_call_operand.vmem [shape: f32[3,1,128], index: 3, kind: input, shape index: {}]   ;;  %s1950_s4 = inlined_call_operand.vmem [shape: f32[4,128,128], index: 4, kind: output, shape index: {}]  }
   0x1 LB: > { %s1301_s16 = sadd.s32 4294967295, %s1736_s15   ;;  %p1305_p0 = scmp.ge.s32.totalorder %s1736_s15, 1  ;;  %s1736_s15 = sphi %s1763_s15, %s14_s15  }
   0x2   : > { %p172_p1 = scmp.lt.s32.totalorder %s1736_s15, 5 }
   0x4   : > { %p173_p2 = pnand %p1305_p0, %p172_p1 }
   0x5   : > { %p203_p3 = scmp.lt.s32.totalorder (!%p173_p2), %s1301_s16, 3 }
   0x6   : > { %176 = sbr.rel (%p173_p2) target bundleno = 1397 (0x575), region = 36 }
   0xb   : > { %v1706_v0 = vld [vmem:[%s1948_s2 + $0x38] sm:$0xff]   ;;  %v1707_v1 = vld [vmem:[%s1948_s2 + $0x30] sm:$0xff]   ;;  %s1952_s16 = smov (!%p203_p3, %s1301_s16), 3  ;;  %v1708_v2 = vld [vmem:[%s1948_s2 + $0x28] sm:$0xff]  }
   0xc   : > { %1522 = vmatprep.subr.bf16.mxu1 %v1706_v0  ;;  %s1391_s21 = sshll.u32 %s1952_s16, 6  ;;  %v1709_v5 = vld [vmem:[%s1948_s2 + $0x20] sm:$0xff]   ;;  %v1710_v7 = vld [vmem:[%s1948_s2 + $0x18] sm:$0xff]   ;;  %v1711_v10 = vld [vmem:[%s1948_s2 + $0x10] sm:$0xff]   ;;  %s1393_s28 = sshll.u32 %s1952_s16, 7 }
   0xd   : > { %1523 = vmatpush3.bf16.msra.mxu1 %v1706_v0  ;;  %s1786_s26 = scalar_lea.vmem %s1947_s1, %s1391_s21  ;;  %s1797_s5 = scalar_lea.vmem %s1946_s0, %s1391_s21  ;;  %v1712_v22 = vld [vmem:[%s1948_s2 + $0x8] sm:$0xff]   ;;  %v1713_v23 = vld [vmem:[%s1948_s2] sm:$0xff]   ;;  %v1714_v48 = vld [vmem:[%s1948_s2 + $0x78] sm:$0xff]  }
   0xe   : > { %1524 = vmatprep.subr.bf16.mxu1 %v1707_v1  ;;  %v1690_v3 = vld [vmem:[%s1786_s26 + $0x38] sm:$0xff]   ;;  %v1691_v4 = vld [vmem:[%s1786_s26 + $0x30] sm:$0xff]   ;;  %v1692_v6 = vld [vmem:[%s1786_s26 + $0x28] sm:$0xff]   ;;  %s1925_s7 = scalar_lea.vmem %s1950_s4, %s1393_s28 }
   0xf   : > { %1490 = vmatprep.subr.bf16.mxu0 %v1690_v3  ;;  %v1693_v8 = vld [vmem:[%s1786_s26 + $0x20] sm:$0xff]   ;;  %v1694_v11 = vld [vmem:[%s1786_s26 + $0x18] sm:$0xff]   ;;  %v1695_v12 = vld [vmem:[%s1786_s26 + $0x10] sm:$0xff]  }
  0x10   : > { %1491 = vmatpush3.bf16.msra.mxu0 %v1690_v3  ;;  %v1804_v9 = vld [vmem:[%s1797_s5] sm:$0xff]   ;;  %v1696_v13 = vld [vmem:[%s1786_s26 + $0x8] sm:$0xff]   ;;  %v1818_v16 = vld [vmem:[%s1797_s5 + $0x10] sm:$0xff]  }
  0x11   : > { %1525 = vmatpush3.bf16.msra.mxu1 %v1707_v1  ;;  %1492 = vmatprep.subr.bf16.mxu0 %v1691_v4  ;;  %v1697_v14 = vld [vmem:[%s1786_s26] sm:$0xff]   ;;  %v1815_v15 = vld [vmem:[%s1797_s5 + $0x8] sm:$0xff]   ;;  %v1823_v17 = vld [vmem:[%s1797_s5 + $0x18] sm:$0xff]  }
  0x12   : > { %1526 = vmatprep.subr.bf16.mxu1 %v1708_v2  ;;  %1506 = vmatprep.mubr.bf16.mxu0 %v1804_v9  ;;  %v1826_v18 = vld [vmem:[%s1797_s5 + $0x20] sm:$0xff]   ;;  %v1831_v19 = vld [vmem:[%s1797_s5 + $0x28] sm:$0xff]   ;;  %v1834_v20 = vld [vmem:[%s1797_s5 + $0x30] sm:$0xff]  }
  0x13   : > { %v1839_v21 = vld [vmem:[%s1797_s5 + $0x38] sm:$0xff]   ;;  %v1715_v49 = vld [vmem:[%s1948_s2 + $0x70] sm:$0xff]   ;;  %v1716_v50 = vld [vmem:[%s1948_s2 + $0x68] sm:$0xff]  }
  0x14   : > { %1493 = vmatpush3.bf16.msra.mxu0 %v1691_v4  ;;  %v1717_v51 = vld [vmem:[%s1948_s2 + $0x60] sm:$0xff]   ;;  %v1718_v52 = vld [vmem:[%s1948_s2 + $0x58] sm:$0xff]   ;;  %v1719_v53 = vld [vmem:[%s1948_s2 + $0x50] sm:$0xff]  }
  0x15   : > { %1527 = vmatpush3.bf16.msra.mxu1 %v1708_v2  ;;  %1494 = vmatprep.subr.bf16.mxu0 %v1692_v6  ;;  %v1328_v3 = vld [vmem:[%s1949_s3] ss:$0 sm:$0xff] }
  0x16   : > { %1528 = vmatprep.subr.bf16.mxu1 %v1709_v5 }
  0x18   : > { %1495 = vmatpush3.bf16.msra.mxu0 %v1692_v6 }
  0x19   : > { %1529 = vmatpush3.bf16.msra.mxu1 %v1709_v5  ;;  %1496 = vmatprep.subr.bf16.mxu0 %v1693_v8 }
  0x1a   : > { %1530 = vmatprep.subr.bf16.mxu1 %v1710_v7 }
  0x1c   : > { %1497 = vmatpush3.bf16.msra.mxu0 %v1693_v8 }
  0x1d   : > { %1531 = vmatpush3.bf16.msra.mxu1 %v1710_v7  ;;  %1498 = vmatprep.subr.bf16.mxu0 %v1694_v11 }
  0x1e   : > { %1532 = vmatprep.subr.bf16.mxu1 %v1711_v10 }
  0x20   : > { %1499 = vmatpush3.bf16.msra.mxu0 %v1694_v11 }
  0x21   : > { %1533 = vmatpush3.bf16.msra.mxu1 %v1711_v10  ;;  %1500 = vmatprep.subr.bf16.mxu0 %v1695_v12 }
  0x22   : > { %1534 = vmatprep.subr.bf16.mxu1 %v1712_v22 }
  0x24   : > { %1501 = vmatpush3.bf16.msra.mxu0 %v1695_v12 }
  0x25   : > { %1502 = vmatprep.subr.bf16.mxu0 %v1696_v13  ;;  %1535 = vmatpush3.bf16.msra.mxu1 %v1712_v22 }
  0x26   : > { %1536 = vmatprep.subr.bf16.mxu1 %v1713_v23 }
  0x28   : > { %1503 = vmatpush3.bf16.msra.mxu0 %v1696_v13 }
  0x29   : > { %1504 = vmatprep.subr.bf16.mxu0 %v1697_v14  ;;  %1537 = vmatpush3.bf16.msra.mxu1 %v1713_v23 }
  0x2a   : > { %1586 = vmatprep.subr.bf16.mxu1 %v1714_v48 }
  0x2c   : > { %1505 = vmatpush3.bf16.msra.mxu0 %v1697_v14 }
  0x2f   : > { %1507 = vmatmul.mubr.bf16.vlgmr.msra.gmra.mxu0 %v1815_v15 }
  0x30   : > { %1510 = vmatprep.mubr.bf16.mxu0 %v1818_v16 }
  0x37   : > { %1511 = vmatmul.mubr.bf16.gmra.mxu0 %v1823_v17 }
  0x38   : > { %1514 = vmatprep.mubr.bf16.mxu0 %v1826_v18 }
  0x3f   : > { %1515 = vmatmul.mubr.bf16.gmra.mxu0 %v1831_v19 }
  0x40   : > { %1518 = vmatprep.mubr.bf16.mxu0 %v1834_v20 }
  0x47   : > { %1519 = vmatmul.mubr.bf16.gmra.mxu0 %v1839_v21 }
  0x48   : > { %1570 = vmatprep.mubr.bf16.mxu0 %v1804_v9 }
  0xef   : > { %v1508_v24 = vpop.f32.mrf.mxu0 }
  0xf1   : > { %v381_v25 = vpop.f32.mrf.mxu0 }
  0xf3   : > { %v1509_v26 = vpop.f32.mrf.mxu0 }
  0xf4   : > { %v445_v29 = vpack.c.bf16 %v1509_v26, %v1508_v24 }
  0xf5   : > { %v384_v27 = vpop.f32.mrf.mxu0 }
  0xf6   : > { %v444_v28 = vpack.c.bf16 %v384_v27, %v381_v25 }
  0xf7   : > { %v1512_v30 = vpop.f32.mrf.mxu0 }
  0xf8   : > { %1538 = vmatprep.mubr.bf16.mxu1 %v444_v28 }
  0xf9   : > { %v397_v31 = vpop.f32.mrf.mxu0  ;;  %1539 = vmatmul.mubr.bf16.vlgmr.msra.gmra.mxu1 %v445_v29 }
  0xfa   : > { %1587 = vmatpush3.bf16.msra.mxu1 %v1714_v48 }
  0xfb   : > { %v1513_v32 = vpop.f32.mrf.mxu0  ;;  %1588 = vmatprep.subr.bf16.mxu1 %v1715_v49 }
  0xfc   : > { %v447_v35 = vpack.c.bf16 %v1513_v32, %v1512_v30 }
  0xfd   : > { %v400_v33 = vpop.f32.mrf.mxu0 }
  0xfe   : > { %v446_v34 = vpack.c.bf16 %v400_v33, %v397_v31  ;;  %1589 = vmatpush3.bf16.msra.mxu1 %v1715_v49 }
  0xff   : > { %v1516_v36 = vpop.f32.mrf.mxu0  ;;  %1590 = vmatprep.subr.bf16.mxu1 %v1716_v50 }
 0x100   : > { %1542 = vmatprep.mubr.bf16.mxu1 %v446_v34 }
 0x101   : > { %v413_v37 = vpop.f32.mrf.mxu0  ;;  %1543 = vmatmul.mubr.bf16.gmra.mxu1 %v447_v35 }
 0x102   : > { %1591 = vmatpush3.bf16.msra.mxu1 %v1716_v50 }
 0x103   : > { %v1517_v38 = vpop.f32.mrf.mxu0  ;;  %1592 = vmatprep.subr.bf16.mxu1 %v1717_v51 }
 0x104   : > { %v449_v41 = vpack.c.bf16 %v1517_v38, %v1516_v36 }
 0x105   : > { %v416_v39 = vpop.f32.mrf.mxu0 }
 0x106   : > { %v448_v40 = vpack.c.bf16 %v416_v39, %v413_v37  ;;  %1593 = vmatpush3.bf16.msra.mxu1 %v1717_v51 }
 0x107   : > { %v1520_v42 = vpop.f32.mrf.mxu0  ;;  %1594 = vmatprep.subr.bf16.mxu1 %v1718_v52 }
 0x108   : > { %1546 = vmatprep.mubr.bf16.mxu1 %v448_v40 }
 0x109   : > { %v429_v43 = vpop.f32.mrf.mxu0  ;;  %1547 = vmatmul.mubr.bf16.gmra.mxu1 %v449_v41 }
 0x10a   : > { %1595 = vmatpush3.bf16.msra.mxu1 %v1718_v52 }
 0x10b   : > { %v1521_v44 = vpop.f32.mrf.mxu0  ;;  %1596 = vmatprep.subr.bf16.mxu1 %v1719_v53 }
 0x10c   : > { %v451_v47 = vpack.c.bf16 %v1521_v44, %v1520_v42 }
 0x10d   : > { %v432_v45 = vpop.f32.mrf.mxu0 }
 0x10e   : > { %v450_v46 = vpack.c.bf16 %v432_v45, %v429_v43  ;;  %1597 = vmatpush3.bf16.msra.mxu1 %v1719_v53 }
 0x110   : > { %1550 = vmatprep.mubr.bf16.mxu1 %v450_v46 }
 0x111   : > { %1551 = vmatmul.mubr.bf16.gmra.mxu1 %v451_v47 }
 0x1b9   : > { %v1540_v54 = vpop.f32.mrf.mxu1 }
 0x1ba   : > { %v566_v44 = vadd.f32 %v1540_v54, %v1328_v3  ;;  %v1720_v54 = vld [vmem:[%s1948_s2 + $0x48] sm:$0xff]  }
 0x1bb   : > { %v557_v55 = vpop.f32.mrf.mxu1  ;;  %1598 = vmatprep.subr.bf16.mxu1 %v1720_v54 }
 0x1bc   : > { %v622_v49 = vmax.f32 %v566_v44, 0.0  ;;  %v558_v50 = vadd.f32 %v1328_v3, %v557_v55  ;;  %1599 = vmatpush3.bf16.msra.mxu1 %v1720_v54  ;;  %v1721_v55 = vld [vmem:[%s1948_s2 + $0x40] sm:$0xff]  }
 0x1bd   : > { %v1541_v56 = vpop.f32.mrf.mxu1  ;;  %1600 = vmatprep.subr.bf16.mxu1 %v1721_v55 }
 0x1be   : > { %v569_v41 = vadd.f32 %v1541_v56, %v1328_v3  ;;  %v620_v53 = vmax.f32 %v558_v50, 0.0 }
 0x1bf   : > { %v560_v57 = vpop.f32.mrf.mxu1 }
 0x1c0   : > { %v623_v46 = vmax.f32 %v569_v41, 0.0  ;;  %v561_v47 = vadd.f32 %v1328_v3, %v560_v57  ;;  %1601 = vmatpush3.bf16.msra.mxu1 %v1721_v55 }
 0x1c1   : > { %v1544_v58 = vpop.f32.mrf.mxu1 }
 0x1c2   : > { %v582_v34 = vadd.f32 %v1544_v58, %v1328_v3  ;;  %v637_v51 = vpack.c.bf16 %v623_v46, %v622_v49  ;;  %v621_v52 = vmax.f32 %v561_v47, 0.0 }
 0x1c3   : > { %v573_v59 = vpop.f32.mrf.mxu1 }
 0x1c4   : > { %v626_v39 = vmax.f32 %v582_v34, 0.0  ;;  %v574_v40 = vadd.f32 %v1328_v3, %v573_v59  ;;  %v636_v58 = vpack.c.bf16 %v621_v52, %v620_v53 }
 0x1c5   : > { %v1545_v60 = vpop.f32.mrf.mxu1 }
 0x1c6   : > { %v585_v31 = vadd.f32 %v1545_v60, %v1328_v3  ;;  %v624_v45 = vmax.f32 %v574_v40, 0.0 }
 0x1c7   : > { %v576_v61 = vpop.f32.mrf.mxu1 }
 0x1c8   : > { %v627_v36 = vmax.f32 %v585_v31, 0.0  ;;  %v577_v37 = vadd.f32 %v1328_v3, %v576_v61 }
 0x1c9   : > { %v1548_v62 = vpop.f32.mrf.mxu1 }
 0x1ca   : > { %v598_v22 = vadd.f32 %v1548_v62, %v1328_v3  ;;  %v639_v42 = vpack.c.bf16 %v627_v36, %v626_v39  ;;  %v625_v43 = vmax.f32 %v577_v37, 0.0 }
 0x1cb   : > { %v589_v63 = vpop.f32.mrf.mxu1 }
 0x1cc   : > { %v630_v29 = vmax.f32 %v598_v22, 0.0  ;;  %v590_v30 = vadd.f32 %v1328_v3, %v589_v63  ;;  %v638_v48 = vpack.c.bf16 %v625_v43, %v624_v45  ;;  %v1354_v43 = vld [vmem:[%s1949_s3 + $0x1] ss:$0 sm:$0xff] }
 0x1cd   : > { %v1549_v0 = vpop.f32.mrf.mxu1 }
 0x1ce   : > { %v601_v11 = vadd.f32 %v1549_v0, %v1328_v3  ;;  %v628_v35 = vmax.f32 %v590_v30, 0.0 }
 0x1cf   : > { %v592_v1 = vpop.f32.mrf.mxu1 }
 0x1d0   : > { %v631_v26 = vmax.f32 %v601_v11, 0.0  ;;  %v593_v27 = vadd.f32 %v1328_v3, %v592_v1 }
 0x1d1   : > { %v1552_v2 = vpop.f32.mrf.mxu1 }
 0x1d2   : > { %v614_v5 = vadd.f32 %v1552_v2, %v1328_v3  ;;  %v641_v32 = vpack.c.bf16 %v631_v26, %v630_v29  ;;  %v629_v33 = vmax.f32 %v593_v27, 0.0  ;;  %v1724_v26 = vld [vmem:[%s1948_s2 + $0xa8] sm:$0xff]   ;;  %v1725_v27 = vld [vmem:[%s1948_s2 + $0xa0] sm:$0xff]   ;;  %v1727_v29 = vld [vmem:[%s1948_s2 + $0x90] sm:$0xff]  }
 0x1d3   : > { %v605_v4 = vpop.f32.mrf.mxu1 }
 0x1d4   : > { %v606_v7 = vadd.f32 %v1328_v3, %v605_v4  ;;  %v634_v12 = vmax.f32 %v614_v5, 0.0  ;;  %v640_v38 = vpack.c.bf16 %v629_v33, %v628_v35 }
 0x1d5   : > { %v1553_v6 = vpop.f32.mrf.mxu1 }
 0x1d6   : > { %v617_v8 = vadd.f32 %v1553_v6, %v1328_v3  ;;  %v632_v23 = vmax.f32 %v606_v7, 0.0 }
 0x1d7   : > { %v608_v10 = vpop.f32.mrf.mxu1 }
 0x1d8   : > { %v635_v13 = vmax.f32 %v617_v8, 0.0  ;;  %v609_v14 = vadd.f32 %v1328_v3, %v608_v10 }
 0x1da   : > { %v643_v24 = vpack.c.bf16 %v635_v13, %v634_v12  ;;  %v633_v25 = vmax.f32 %v609_v14, 0.0 }
 0x1dc   : > { %v642_v28 = vpack.c.bf16 %v633_v25, %v632_v23  ;;  %1554 = vmatprep.subr.bf16.mxu0 %v643_v24  ;;  %v1723_v25 = vld [vmem:[%s1948_s2 + $0xb0] sm:$0xff]  }
 0x1dd   : > { %1555 = vmatpush3.bf16.msra.mxu0 %v643_v24  ;;  %v1722_v24 = vld [vmem:[%s1948_s2 + $0xb8] sm:$0xff]  }
 0x1de   : > { %1556 = vmatprep.subr.bf16.mxu0 %v642_v28  ;;  %1650 = vmatprep.subr.bf16.mxu1 %v1722_v24 }
 0x1e1   : > { %1557 = vmatpush3.bf16.msra.mxu0 %v642_v28  ;;  %v1726_v28 = vld [vmem:[%s1948_s2 + $0x98] sm:$0xff]  }
 0x1e2   : > { %1558 = vmatprep.subr.bf16.mxu0 %v641_v32 }
 0x1e5   : > { %1559 = vmatpush3.bf16.msra.mxu0 %v641_v32 }
 0x1e6   : > { %1560 = vmatprep.subr.bf16.mxu0 %v640_v38 }
 0x1e9   : > { %1561 = vmatpush3.bf16.msra.mxu0 %v640_v38 }
 0x1ea   : > { %1562 = vmatprep.subr.bf16.mxu0 %v639_v42 }
 0x1ed   : > { %1563 = vmatpush3.bf16.msra.mxu0 %v639_v42 }
 0x1ee   : > { %1564 = vmatprep.subr.bf16.mxu0 %v638_v48 }
 0x1f1   : > { %1565 = vmatpush3.bf16.msra.mxu0 %v638_v48 }
 0x1f2   : > { %1566 = vmatprep.subr.bf16.mxu0 %v637_v51 }
 0x1f5   : > { %1567 = vmatpush3.bf16.msra.mxu0 %v637_v51 }
 0x1f6   : > { %1568 = vmatprep.subr.bf16.mxu0 %v636_v58 }
 0x1f9   : > { %1569 = vmatpush3.bf16.msra.mxu0 %v636_v58 }
 0x1fc   : > { %1571 = vmatmul.mubr.bf16.vlgmr.msra.gmra.mxu0 %v1815_v15 }
 0x1fd   : > { %1574 = vmatprep.mubr.bf16.mxu0 %v1818_v16 }
 0x204   : > { %1575 = vmatmul.mubr.bf16.gmra.mxu0 %v1823_v17 }
 0x205   : > { %1578 = vmatprep.mubr.bf16.mxu0 %v1826_v18 }
 0x20c   : > { %1579 = vmatmul.mubr.bf16.gmra.mxu0 %v1831_v19 }
 0x20d   : > { %1582 = vmatprep.mubr.bf16.mxu0 %v1834_v20 }
 0x214   : > { %1583 = vmatmul.mubr.bf16.gmra.mxu0 %v1839_v21 }
 0x215   : > { %1634 = vmatprep.mubr.bf16.mxu0 %v1804_v9 }
 0x2bc   : > { %v1572_v56 = vpop.f32.mrf.mxu0 }
 0x2be   : > { %v678_v57 = vpop.f32.mrf.mxu0 }
 0x2c0   : > { %v1573_v59 = vpop.f32.mrf.mxu0 }
 0x2c1   : > { %v742_v62 = vpack.c.bf16 %v1573_v59, %v1572_v56 }
 0x2c2   : > { %v681_v60 = vpop.f32.mrf.mxu0 }
 0x2c3   : > { %v741_v61 = vpack.c.bf16 %v681_v60, %v678_v57 }
 0x2c4   : > { %v1576_v63 = vpop.f32.mrf.mxu0 }
 0x2c5   : > { %1602 = vmatprep.mubr.bf16.mxu1 %v741_v61 }
 0x2c6   : > { %v694_v9 = vpop.f32.mrf.mxu0  ;;  %1603 = vmatmul.mubr.bf16.vlgmr.msra.gmra.mxu1 %v742_v62 }
 0x2c7   : > { %1651 = vmatpush3.bf16.msra.mxu1 %v1722_v24 }
 0x2c8   : > { %v1577_v0 = vpop.f32.mrf.mxu0  ;;  %1652 = vmatprep.subr.bf16.mxu1 %v1723_v25 }
 0x2c9   : > { %v744_v3 = vpack.c.bf16 %v1577_v0, %v1576_v63 }
 0x2ca   : > { %v697_v1 = vpop.f32.mrf.mxu0 }
 0x2cb   : > { %v743_v2 = vpack.c.bf16 %v697_v1, %v694_v9  ;;  %1653 = vmatpush3.bf16.msra.mxu1 %v1723_v25 }
 0x2cc   : > { %v1580_v4 = vpop.f32.mrf.mxu0  ;;  %1654 = vmatprep.subr.bf16.mxu1 %v1724_v26 }
 0x2cd   : > { %1606 = vmatprep.mubr.bf16.mxu1 %v743_v2 }
 0x2ce   : > { %v710_v5 = vpop.f32.mrf.mxu0  ;;  %1607 = vmatmul.mubr.bf16.gmra.mxu1 %v744_v3 }
 0x2cf   : > { %1655 = vmatpush3.bf16.msra.mxu1 %v1724_v26 }
 0x2d0   : > { %v1581_v6 = vpop.f32.mrf.mxu0  ;;  %1656 = vmatprep.subr.bf16.mxu1 %v1725_v27 }
 0x2d1   : > { %v746_v10 = vpack.c.bf16 %v1581_v6, %v1580_v4 }
 0x2d2   : > { %v713_v7 = vpop.f32.mrf.mxu0 }
 0x2d3   : > { %v745_v8 = vpack.c.bf16 %v713_v7, %v710_v5  ;;  %1657 = vmatpush3.bf16.msra.mxu1 %v1725_v27 }
 0x2d4   : > { %v1584_v11 = vpop.f32.mrf.mxu0  ;;  %1658 = vmatprep.subr.bf16.mxu1 %v1726_v28 }
 0x2d5   : > { %1610 = vmatprep.mubr.bf16.mxu1 %v745_v8 }
 0x2d6   : > { %v726_v12 = vpop.f32.mrf.mxu0  ;;  %1611 = vmatmul.mubr.bf16.gmra.mxu1 %v746_v10 }
 0x2d7   : > { %1659 = vmatpush3.bf16.msra.mxu1 %v1726_v28 }
 0x2d8   : > { %v1585_v13 = vpop.f32.mrf.mxu0  ;;  %1660 = vmatprep.subr.bf16.mxu1 %v1727_v29 }
 0x2d9   : > { %v748_v23 = vpack.c.bf16 %v1585_v13, %v1584_v11 }
 0x2da   : > { %v729_v14 = vpop.f32.mrf.mxu0 }
 0x2db   : > { %v747_v22 = vpack.c.bf16 %v729_v14, %v726_v12  ;;  %1661 = vmatpush3.bf16.msra.mxu1 %v1727_v29 }
 0x2dd   : > { %1614 = vmatprep.mubr.bf16.mxu1 %v747_v22 }
 0x2de   : > { %1615 = vmatmul.mubr.bf16.gmra.mxu1 %v748_v23 }
 0x386   : > { %v1604_v30 = vpop.f32.mrf.mxu1 }
 0x387   : > { %v865_v12 = vadd.f32 %v1604_v30, %v1354_v43  ;;  %v1728_v30 = vld [vmem:[%s1948_s2 + $0x88] sm:$0xff]  }
 0x388   : > { %v856_v31 = vpop.f32.mrf.mxu1  ;;  %1662 = vmatprep.subr.bf16.mxu1 %v1728_v30 }
 0x389   : > { %v921_v24 = vmax.f32 %v865_v12, 0.0  ;;  %v857_v25 = vadd.f32 %v1354_v43, %v856_v31  ;;  %1663 = vmatpush3.bf16.msra.mxu1 %v1728_v30 }
 0x38a   : > { %v1605_v32 = vpop.f32.mrf.mxu1 }
 0x38b   : > { %v868_v8 = vadd.f32 %v1605_v32, %v1354_v43  ;;  %v919_v28 = vmax.f32 %v857_v25, 0.0 }
 0x38c   : > { %v859_v33 = vpop.f32.mrf.mxu1 }
 0x38d   : > { %v922_v14 = vmax.f32 %v868_v8, 0.0  ;;  %v860_v22 = vadd.f32 %v1354_v43, %v859_v33 }
 0x38e   : > { %v1608_v34 = vpop.f32.mrf.mxu1 }
 0x38f   : > { %v881_v1 = vadd.f32 %v1608_v34, %v1354_v43  ;;  %v936_v26 = vpack.c.bf16 %v922_v14, %v921_v24  ;;  %v920_v27 = vmax.f32 %v860_v22, 0.0 }
 0x390   : > { %v872_v35 = vpop.f32.mrf.mxu1 }
 0x391   : > { %v925_v6 = vmax.f32 %v881_v1, 0.0  ;;  %v873_v7 = vadd.f32 %v1354_v43, %v872_v35  ;;  %v935_v29 = vpack.c.bf16 %v920_v27, %v919_v28 }
 0x392   : > { %v1609_v36 = vpop.f32.mrf.mxu1 }
 0x393   : > { %v884_v63 = vadd.f32 %v1609_v36, %v1354_v43  ;;  %v923_v13 = vmax.f32 %v873_v7, 0.0 }
 0x394   : > { %v875_v37 = vpop.f32.mrf.mxu1 }
 0x395   : > { %v926_v3 = vmax.f32 %v884_v63, 0.0  ;;  %v876_v4 = vadd.f32 %v1354_v43, %v875_v37 }
 0x396   : > { %v1612_v38 = vpop.f32.mrf.mxu1 }
 0x397   : > { %v897_v58 = vadd.f32 %v1612_v38, %v1354_v43  ;;  %v938_v10 = vpack.c.bf16 %v926_v3, %v925_v6  ;;  %v924_v11 = vmax.f32 %v876_v4, 0.0 }
 0x398   : > { %v888_v39 = vpop.f32.mrf.mxu1 }
 0x399   : > { %v929_v61 = vmax.f32 %v897_v58, 0.0  ;;  %v889_v62 = vadd.f32 %v1354_v43, %v888_v39  ;;  %v937_v23 = vpack.c.bf16 %v924_v11, %v923_v13 }
 0x39a   : > { %v1613_v40 = vpop.f32.mrf.mxu1 }
 0x39b   : > { %v900_v50 = vadd.f32 %v1613_v40, %v1354_v43  ;;  %v927_v2 = vmax.f32 %v889_v62, 0.0 }
 0x39c   : > { %v891_v41 = vpop.f32.mrf.mxu1 }
 0x39d   : > { %v930_v57 = vmax.f32 %v900_v50, 0.0  ;;  %v892_v59 = vadd.f32 %v1354_v43, %v891_v41 }
 0x39e   : > { %v1616_v42 = vpop.f32.mrf.mxu1 }
 0x39f   : > { %v913_v45 = vadd.f32 %v1616_v42, %v1354_v43  ;;  %v940_v9 = vpack.c.bf16 %v930_v57, %v929_v61  ;;  %v928_v0 = vmax.f32 %v892_v59, 0.0 }
 0x3a0   : > { %v904_v44 = vpop.f32.mrf.mxu1 }
 0x3a1   : > { %v905_v47 = vadd.f32 %v1354_v43, %v904_v44  ;;  %v933_v51 = vmax.f32 %v913_v45, 0.0  ;;  %v939_v5 = vpack.c.bf16 %v928_v0, %v927_v2 }
 0x3a2   : > { %v1617_v46 = vpop.f32.mrf.mxu1 }
 0x3a3   : > { %v916_v48 = vadd.f32 %v1617_v46, %v1354_v43  ;;  %v931_v54 = vmax.f32 %v905_v47, 0.0 }
 0x3a4   : > { %v907_v49 = vpop.f32.mrf.mxu1 }
 0x3a5   : > { %v934_v52 = vmax.f32 %v916_v48, 0.0  ;;  %v908_v53 = vadd.f32 %v1354_v43, %v907_v49  ;;  %v1380_v49 = vld [vmem:[%s1949_s3 + $0x2] ss:$0 sm:$0xff] }
 0x3a7   : > { %v942_v55 = vpack.c.bf16 %v934_v52, %v933_v51  ;;  %v932_v56 = vmax.f32 %v908_v53, 0.0 }
 0x3a9   : > { %v941_v60 = vpack.c.bf16 %v932_v56, %v931_v54  ;;  %1618 = vmatprep.subr.bf16.mxu0 %v942_v55 }
 0x3aa   : > { %1619 = vmatpush3.bf16.msra.mxu0 %v942_v55 }
 0x3ab   : > { %1620 = vmatprep.subr.bf16.mxu0 %v941_v60 }
 0x3ae   : > { %1621 = vmatpush3.bf16.msra.mxu0 %v941_v60 }
 0x3af   : > { %1622 = vmatprep.subr.bf16.mxu0 %v940_v9 }
 0x3b2   : > { %1623 = vmatpush3.bf16.msra.mxu0 %v940_v9 }
 0x3b3   : > { %1624 = vmatprep.subr.bf16.mxu0 %v939_v5 }
 0x3b6   : > { %1625 = vmatpush3.bf16.msra.mxu0 %v939_v5 }
 0x3b7   : > { %1626 = vmatprep.subr.bf16.mxu0 %v938_v10 }
 0x3ba   : > { %1627 = vmatpush3.bf16.msra.mxu0 %v938_v10 }
 0x3bb   : > { %1628 = vmatprep.subr.bf16.mxu0 %v937_v23 }
 0x3be   : > { %1629 = vmatpush3.bf16.msra.mxu0 %v937_v23 }
 0x3bf   : > { %1630 = vmatprep.subr.bf16.mxu0 %v936_v26 }
 0x3c2   : > { %1631 = vmatpush3.bf16.msra.mxu0 %v936_v26 }
 0x3c3   : > { %1632 = vmatprep.subr.bf16.mxu0 %v935_v29 }
 0x3c6   : > { %1633 = vmatpush3.bf16.msra.mxu0 %v935_v29 }
 0x3c9   : > { %1635 = vmatmul.mubr.bf16.vlgmr.msra.gmra.mxu0 %v1815_v15  ;;  %v1729_v15 = vld [vmem:[%s1948_s2 + $0x80] sm:$0xff]  }
 0x3ca   : > { %1638 = vmatprep.mubr.bf16.mxu0 %v1818_v16  ;;  %1664 = vmatprep.subr.bf16.mxu1 %v1729_v15 }
 0x3cb   : > { %1665 = vmatpush3.bf16.msra.mxu1 %v1729_v15 }
 0x3d1   : > { %1639 = vmatmul.mubr.bf16.gmra.mxu0 %v1823_v17 }
 0x3d2   : > { %1642 = vmatprep.mubr.bf16.mxu0 %v1826_v18 }
 0x3d9   : > { %1643 = vmatmul.mubr.bf16.gmra.mxu0 %v1831_v19 }
 0x3da   : > { %1646 = vmatprep.mubr.bf16.mxu0 %v1834_v20 }
 0x3e1   : > { %1647 = vmatmul.mubr.bf16.gmra.mxu0 %v1839_v21 }
 0x489   : > { %v1636_v16 = vpop.f32.mrf.mxu0 }
 0x48b   : > { %v977_v17 = vpop.f32.mrf.mxu0 }
 0x48d   : > { %v1637_v18 = vpop.f32.mrf.mxu0 }
 0x48e   : > { %v1041_v20 = vpack.c.bf16 %v1637_v18, %v1636_v16 }
 0x48f   : > { %v980_v19 = vpop.f32.mrf.mxu0 }
 0x490   : > { %v1040_v31 = vpack.c.bf16 %v980_v19, %v977_v17 }
 0x491   : > { %v1640_v32 = vpop.f32.mrf.mxu0 }
 0x492   : > { %1666 = vmatprep.mubr.bf16.mxu1 %v1040_v31 }
 0x493   : > { %v993_v21 = vpop.f32.mrf.mxu0  ;;  %1667 = vmatmul.mubr.bf16.vlgmr.msra.gmra.mxu1 %v1041_v20 }
 0x495   : > { %v1641_v33 = vpop.f32.mrf.mxu0 }
 0x496   : > { %v1043_v36 = vpack.c.bf16 %v1641_v33, %v1640_v32 }
 0x497   : > { %v996_v34 = vpop.f32.mrf.mxu0 }
 0x498   : > { %v1042_v35 = vpack.c.bf16 %v996_v34, %v993_v21 }
 0x499   : > { %v1644_v37 = vpop.f32.mrf.mxu0 }
 0x49a   : > { %1670 = vmatprep.mubr.bf16.mxu1 %v1042_v35 }
 0x49b   : > { %v1009_v38 = vpop.f32.mrf.mxu0  ;;  %1671 = vmatmul.mubr.bf16.gmra.mxu1 %v1043_v36 }
 0x49d   : > { %v1645_v39 = vpop.f32.mrf.mxu0 }
 0x49e   : > { %v1045_v42 = vpack.c.bf16 %v1645_v39, %v1644_v37 }
 0x49f   : > { %v1012_v40 = vpop.f32.mrf.mxu0 }
 0x4a0   : > { %v1044_v41 = vpack.c.bf16 %v1012_v40, %v1009_v38 }
 0x4a1   : > { %v1648_v43 = vpop.f32.mrf.mxu0 }
 0x4a2   : > { %1674 = vmatprep.mubr.bf16.mxu1 %v1044_v41 }
 0x4a3   : > { %v1025_v44 = vpop.f32.mrf.mxu0  ;;  %1675 = vmatmul.mubr.bf16.gmra.mxu1 %v1045_v42 }
 0x4a5   : > { %v1649_v45 = vpop.f32.mrf.mxu0 }
 0x4a6   : > { %v1047_v48 = vpack.c.bf16 %v1649_v45, %v1648_v43 }
 0x4a7   : > { %v1028_v46 = vpop.f32.mrf.mxu0 }
 0x4a8   : > { %v1046_v47 = vpack.c.bf16 %v1028_v46, %v1025_v44 }
 0x4aa   : > { %1678 = vmatprep.mubr.bf16.mxu1 %v1046_v47 }
 0x4ab   : > { %1679 = vmatmul.mubr.bf16.gmra.mxu1 %v1047_v48 }
 0x553   : > { %v1668_v50 = vpop.f32.mrf.mxu1 }
 0x554   : > { %v1164_v51 = vadd.f32 %v1668_v50, %v1380_v49 }
 0x555   : > { %v1155_v52 = vpop.f32.mrf.mxu1 }
 0x556   : > { %1220 = vst [vmem:[%s1925_s7 + $0x10] sm:$0xff] %v1164_v51  ;;  %v1156_v53 = vadd.f32 %v1380_v49, %v1155_v52 }
 0x557   : > { %v1669_v58 = vpop.f32.mrf.mxu1 }
 0x558   : > { %1218 = vst [vmem:[%s1925_s7] sm:$0xff] %v1156_v53  ;;  %v1167_v54 = vadd.f32 %v1669_v58, %v1380_v49 }
 0x559   : > { %v1158_v55 = vpop.f32.mrf.mxu1 }
 0x55a   : > { %1221 = vst [vmem:[%s1925_s7 + $0x18] sm:$0xff] %v1167_v54  ;;  %v1159_v56 = vadd.f32 %v1380_v49, %v1158_v55 }
 0x55b   : > { %v1672_v57 = vpop.f32.mrf.mxu1 }
 0x55c   : > { %1219 = vst [vmem:[%s1925_s7 + $0x8] sm:$0xff] %v1159_v56  ;;  %v1180_v59 = vadd.f32 %v1672_v57, %v1380_v49 }
 0x55d   : > { %v1171_v60 = vpop.f32.mrf.mxu1 }
 0x55e   : > { %1224 = vst [vmem:[%s1925_s7 + $0x30] sm:$0xff] %v1180_v59  ;;  %v1172_v61 = vadd.f32 %v1380_v49, %v1171_v60 }
 0x55f   : > { %v1673_v62 = vpop.f32.mrf.mxu1 }
 0x560   : > { %1222 = vst [vmem:[%s1925_s7 + $0x20] sm:$0xff] %v1172_v61  ;;  %v1183_v63 = vadd.f32 %v1673_v62, %v1380_v49 }
 0x561   : > { %v1174_v9 = vpop.f32.mrf.mxu1 }
 0x562   : > { %1225 = vst [vmem:[%s1925_s7 + $0x38] sm:$0xff] %v1183_v63  ;;  %v1175_v0 = vadd.f32 %v1380_v49, %v1174_v9 }
 0x563   : > { %v1676_v1 = vpop.f32.mrf.mxu1 }
 0x564   : > { %1223 = vst [vmem:[%s1925_s7 + $0x28] sm:$0xff] %v1175_v0  ;;  %v1196_v2 = vadd.f32 %v1676_v1, %v1380_v49 }
 0x565   : > { %v1187_v3 = vpop.f32.mrf.mxu1 }
 0x566   : > { %1228 = vst [vmem:[%s1925_s7 + $0x50] sm:$0xff] %v1196_v2  ;;  %v1188_v4 = vadd.f32 %v1380_v49, %v1187_v3 }
 0x567   : > { %v1677_v5 = vpop.f32.mrf.mxu1 }
 0x568   : > { %1226 = vst [vmem:[%s1925_s7 + $0x40] sm:$0xff] %v1188_v4  ;;  %v1199_v6 = vadd.f32 %v1677_v5, %v1380_v49 }
 0x569   : > { %v1190_v7 = vpop.f32.mrf.mxu1 }
 0x56a   : > { %1229 = vst [vmem:[%s1925_s7 + $0x58] sm:$0xff] %v1199_v6  ;;  %v1191_v8 = vadd.f32 %v1380_v49, %v1190_v7 }
 0x56b   : > { %v1680_v10 = vpop.f32.mrf.mxu1 }
 0x56c   : > { %1227 = vst [vmem:[%s1925_s7 + $0x48] sm:$0xff] %v1191_v8  ;;  %v1212_v11 = vadd.f32 %v1680_v10, %v1380_v49 }
 0x56d   : > { %v1203_v12 = vpop.f32.mrf.mxu1 }
 0x56e   : > { %1232 = vst [vmem:[%s1925_s7 + $0x70] sm:$0xff] %v1212_v11  ;;  %v1204_v13 = vadd.f32 %v1380_v49, %v1203_v12 }
 0x56f   : > { %v1681_v14 = vpop.f32.mrf.mxu1 }
 0x570   : > { %1230 = vst [vmem:[%s1925_s7 + $0x60] sm:$0xff] %v1204_v13  ;;  %v1215_v22 = vadd.f32 %v1681_v14, %v1380_v49 }
 0x571   : > { %v1206_v23 = vpop.f32.mrf.mxu1 }
 0x572   : > { %1233 = vst [vmem:[%s1925_s7 + $0x78] sm:$0xff] %v1215_v22  ;;  %v1207_v24 = vadd.f32 %v1380_v49, %v1206_v23 }
 0x574   : > { %1231 = vst [vmem:[%s1925_s7 + $0x68] sm:$0xff] %v1207_v24 }
 0x575 PF: > { %s14_s15 = sadd.s32 1, %s1736_s15  }
 0x576   : > { %p11_p4 = scmp.ge.s32.totalorder %s14_s15, 6  }
 0x578   :  { %13 = sbr.rel (!%p11_p4) target bundleno = 1 (0x1), region = 73 }

</bundles_post_ra>
